<compile_context>
chip_gen: v5e
topology: v5e:2x2
jax: 0.10.0
libtpu: 0.0.40
codegen_flags: <defaults>
</compile_context>

<pallas_src>
import functools

import jax
import jax.numpy as jnp
from jax.experimental import pallas as pl
from jax.experimental.pallas import tpu as pltpu


def _round_up(v, m):
    return (v + m - 1) // m * m


def _cdiv(a, b):
    return -(-a // b)


def _choose_tile(size, tile_max, align):
    """Largest aligned tile <= tile_max that minimizes padding of `size`."""
    padded = max(_round_up(size, align), align)
    if padded <= tile_max:
        return padded
    n_tiles = _cdiv(padded, tile_max)
    return _round_up(_cdiv(padded, n_tiles), align)


def classifier_square_kernel(x_ref, w_ref, c_ref, o_ref):
    k = pl.program_id(2)

    # bf16 x bf16 -> f32 on the MXU.  x_ref: (tm, tk), w_ref: (tk, tn).
    y = jnp.dot(x_ref[...], w_ref[...], preferred_element_type=jnp.float32)

    # Accumulate directly into the resident f32 output tile (no scratch, no
    # zero-init pass).
    @pl.when(k == 0)
    def _():
        o_ref[...] = y

    @pl.when(k != 0)
    def _():
        o_ref[...] += y

    # Epilogue only on the final reduction step: (y - c)^2.
    @pl.when(k == pl.num_programs(2) - 1)
    def _():
        d = o_ref[...] - c_ref[...]          # (tm, tn) - (1, tn) broadcast
        o_ref[...] = d * d


@functools.partial(jax.jit, static_argnames=("tm_max", "tn_max", "tk_max"))
def classifier_square(x, w, c, *, tm_max=512, tn_max=512, tk_max=1024):
    """x: (B, dim); w: (nc, dim) (nn.Linear weight layout); c: (nc,)."""
    B, dim = x.shape
    nc, dim_w = w.shape
    assert dim == dim_w and c.shape == (nc,)

    # Adaptive, minimally-padding tile selection (sublane mult of 8, lane mult
    # of 128 so output stores stay lane-dense / unmasked).
    tm = _choose_tile(B, tm_max, 8)
    tn = _choose_tile(nc, tn_max, 128)
    tk = _choose_tile(dim, tk_max, 128)

    Bp = _round_up(B, tm)
    Np = _round_up(nc, tn)
    Dp = _round_up(dim, tk)

    # Megacore (v7x): ensure >= 2 iterations over the parallel axes.  Prefer
    # splitting nc (duplicates only the small x reads); only split tiles into
    # divisors of the already-padded extent so no extra padding is introduced.
    if (Bp // tm) * (Np // tn) < 2:
        if Np >= 256:
            cand = (tn // 2) // 128 * 128
            while cand >= 128 and Np % cand != 0:
                cand -= 128
            if cand >= 128:
                tn = cand
        elif Bp >= 16:
            cand = (tm // 2) // 8 * 8
            while cand >= 8 and Bp % cand != 0:
                cand -= 8
            if cand >= 8:
                tm = cand

    grid = (Bp // tm, Np // tn, Dp // tk)

    # bf16 operands (f32 accumulation inside the kernel); W transposed once to
    # (dim, nc) so the kernel RHS contraction dim sits on sublanes (no per-step
    # XLU transpose).
    xp = x.astype(jnp.bfloat16)
    wp = w.astype(jnp.bfloat16).T                      # (dim, nc)
    if Bp != B or Dp != dim:
        xp = jnp.pad(xp, ((0, Bp - B), (0, Dp - dim)))
    if Dp != dim or Np != nc:
        wp = jnp.pad(wp, ((0, Dp - dim), (0, Np - nc)))
    cp = c.reshape(1, nc).astype(jnp.float32)
    if Np != nc:
        cp = jnp.pad(cp, ((0, 0), (0, Np - nc)))

    # Generation-aware VMEM limit: leave headroom under the physical capacity
    # (64 MiB on v7x, 128 MiB on v5e/v6e).
    try:
        vmem_cap = int(getattr(pltpu.get_tpu_info(), "vmem_capacity_bytes",
                               64 << 20))
    except Exception:
        vmem_cap = 64 << 20
    buf_bytes = (2 * (2 * tm * tk + 2 * tk * tn)          # bf16 inputs, dbl-buffered
                 + 4 * (2 * tm * tn + 2 * tn))            # f32 output + c
    ceiling = max(vmem_cap - (16 << 20), 32 << 20)
    vmem_limit = int(min(max(2 * buf_bytes + (8 << 20), 32 << 20), ceiling))

    gm, gn, _ = grid
    out = pl.pallas_call(
        classifier_square_kernel,
        out_shape=jax.ShapeDtypeStruct((Bp, Np), jnp.float32),
        grid_spec=pltpu.PrefetchScalarGridSpec(
            num_scalar_prefetch=0,
            grid=grid,
            in_specs=[
                # NOTE: if a profile shows exposed DMA, add
                # pipeline_mode=pl.Buffered(3) to the x / W specs.
                pl.BlockSpec((tm, tk), lambda i, j, k: (i, k)),   # x tile
                pl.BlockSpec((tk, tn), lambda i, j, k: (k, j)),   # W^T tile (dim, nc)
                pl.BlockSpec((1, tn), lambda i, j, k: (0, j)),    # c tile (epilogue)
            ],
            out_specs=pl.BlockSpec((tm, tn), lambda i, j, k: (i, j)),
        ),
        compiler_params=pltpu.CompilerParams(
            dimension_semantics=("parallel", "parallel", "arbitrary"),
            vmem_limit_bytes=vmem_limit,
        ),
        cost_estimate=pl.CostEstimate(
            flops=2 * B * dim * nc + 3 * B * nc,
            transcendentals=0,
            bytes_accessed=2 * (Bp * Dp * gn + Dp * Np * gm)
                           + 4 * (Np + Bp * Np),
        ),
    )(xp, wp, cp)

    if Bp != B or Np != nc:
        out = out[:B, :nc]
    return out.astype(x.dtype)


def classifier_square_ref(x, w, c):
    y = x @ w.T
    return (y - c[None, :]) ** 2


if __name__ == "__main__":
    key = jax.random.PRNGKey(0)
    kx, kw, kc = jax.random.split(key, 3)

    # Small shape consistent with the module: Classifier_Square(dim=32, nc=16), batch=8.
    B, dim, nc = 8, 32, 16
    x = jax.random.normal(kx, (B, dim), dtype=jnp.float32)
    w = jax.random.normal(kw, (nc, dim), dtype=jnp.float32) * 0.05   # Linear(dim, nc, bias=False)
    c = jnp.ones((nc,), dtype=jnp.float32)                           # c = ones(nc)

    out = jax.block_until_ready(classifier_square(x, w, c))
    ref = classifier_square_ref(x, w, c)
    assert out.shape == (B, nc)
    assert jnp.allclose(out, ref, atol=1e-2, rtol=1e-2)

    # Larger shape exercising the tiled grid + megacore nc split + epilogue path.
    B2, dim2, nc2 = 384, 1024, 256
    kx2, kw2 = jax.random.split(kc)
    x2 = jax.random.normal(kx2, (B2, dim2), dtype=jnp.float32)
    w2 = jax.random.normal(kw2, (nc2, dim2), dtype=jnp.float32) * 0.02
    c2 = jnp.ones((nc2,), dtype=jnp.float32)

    out2 = jax.block_until_ready(classifier_square(x2, w2, c2))
    ref2 = classifier_square_ref(x2, w2, c2)
    assert out2.shape == (B2, nc2)
    assert jnp.allclose(out2, ref2, atol=2e-2, rtol=2e-2)

    print("KERNEL_OK")
</pallas_src>

<mosaic_0001>
module attributes {stable_mosaic.version = 11 : i64} {
  func.func @classifier_square_kernel(%arg0: i32, %arg1: i32, %arg2: i32, %arg3: memref<8x128xbf16, #tpu.memory_space<vmem>>, %arg4: memref<128x128xbf16, #tpu.memory_space<vmem>>, %arg5: memref<1x128xf32, #tpu.memory_space<vmem>>, %arg6: memref<8x128xf32, #tpu.memory_space<vmem>>) attributes {dimension_semantics = [#tpu.dimension_semantics<parallel>, #tpu.dimension_semantics<parallel>, #tpu.dimension_semantics<arbitrary>], iteration_bounds = array<i64: 1, 1, 1>, scalar_prefetch = 0 : i64, scratch_operands = 0 : i64, tpu.core_type = #tpu.core_type<tc>, window_params = [{transform_indices = @transform_0, window_bounds = array<i64: 8, 128>}, {transform_indices = @transform_1, window_bounds = array<i64: 128, 128>}, {transform_indices = @transform_2, window_bounds = array<i64: 1, 128>}, {transform_indices = @transform_3, window_bounds = array<i64: 8, 128>}]} {
    %c0 = arith.constant 0 : index
    %c0_0 = arith.constant 0 : index
    %0 = vector.load %arg3[%c0, %c0_0] : memref<8x128xbf16, #tpu.memory_space<vmem>>, vector<8x128xbf16>
    %c0_1 = arith.constant 0 : index
    %c0_2 = arith.constant 0 : index
    %1 = vector.load %arg4[%c0_1, %c0_2] : memref<128x128xbf16, #tpu.memory_space<vmem>>, vector<128x128xbf16>
    %cst = arith.constant dense<0.000000e+00> : vector<8x128xf32>
    %2 = tpu.matmul %0, %1, %cst {dimension_numbers = #tpu.dot_dimension_numbers<[1], [0], [0], [1], [0, 0, 1, 1], [], []>} : vector<8x128xbf16>, vector<128x128xbf16>, vector<8x128xf32> -> vector<8x128xf32>
    %c0_i32 = arith.constant 0 : i32
    %3 = arith.cmpi eq, %arg2, %c0_i32 : i32
    %4 = arith.extui %3 : i1 to i32
    %c0_i32_3 = arith.constant 0 : i32
    %5 = arith.cmpi ne, %4, %c0_i32_3 : i32
    scf.if %5 {
      %c0_8 = arith.constant 0 : index
      %c0_9 = arith.constant 0 : index
      %12 = vector.load %arg6[%c0_8, %c0_9] : memref<8x128xf32, #tpu.memory_space<vmem>>, vector<8x128xf32>
      tpu.vector_store %arg6[%c0_8, %c0_9], %2 {strides = array<i32>} : memref<8x128xf32, #tpu.memory_space<vmem>>, vector<8x128xf32>,
    } else {
    }
    %c0_i32_4 = arith.constant 0 : i32
    %6 = arith.cmpi ne, %arg2, %c0_i32_4 : i32
    %7 = arith.extui %6 : i1 to i32
    %c0_i32_5 = arith.constant 0 : i32
    %8 = arith.cmpi ne, %7, %c0_i32_5 : i32
    scf.if %8 {
      %c0_8 = arith.constant 0 : index
      %c0_9 = arith.constant 0 : index
      %12 = vector.load %arg6[%c0_8, %c0_9] : memref<8x128xf32, #tpu.memory_space<vmem>>, vector<8x128xf32>
      %13 = arith.addf %12, %2 : vector<8x128xf32>
      %c0_10 = arith.constant 0 : index
      %c0_11 = arith.constant 0 : index
      %14 = vector.load %arg6[%c0_10, %c0_11] : memref<8x128xf32, #tpu.memory_space<vmem>>, vector<8x128xf32>
      tpu.vector_store %arg6[%c0_10, %c0_11], %13 {strides = array<i32>} : memref<8x128xf32, #tpu.memory_space<vmem>>, vector<8x128xf32>,
    } else {
    }
    %c0_i32_6 = arith.constant 0 : i32
    %9 = arith.cmpi eq, %arg2, %c0_i32_6 : i32
    %10 = arith.extui %9 : i1 to i32
    %c0_i32_7 = arith.constant 0 : i32
    %11 = arith.cmpi ne, %10, %c0_i32_7 : i32
    scf.if %11 {
      %c0_8 = arith.constant 0 : index
      %c0_9 = arith.constant 0 : index
      %12 = vector.load %arg6[%c0_8, %c0_9] : memref<8x128xf32, #tpu.memory_space<vmem>>, vector<8x128xf32>
      %c0_10 = arith.constant 0 : index
      %c0_11 = arith.constant 0 : index
      %13 = vector.load %arg5[%c0_10, %c0_11] : memref<1x128xf32, #tpu.memory_space<vmem>>, vector<1x128xf32>
      %14 = vector.broadcast %13 : vector<1x128xf32> to vector<8x128xf32>
      %15 = arith.subf %12, %14 : vector<8x128xf32>
      %16 = arith.mulf %15, %15 : vector<8x128xf32>
      %c0_12 = arith.constant 0 : index
      %c0_13 = arith.constant 0 : index
      %17 = vector.load %arg6[%c0_12, %c0_13] : memref<8x128xf32, #tpu.memory_space<vmem>>, vector<8x128xf32>
      tpu.vector_store %arg6[%c0_12, %c0_13], %16 {strides = array<i32>} : memref<8x128xf32, #tpu.memory_space<vmem>>, vector<8x128xf32>,
    } else {
    }
    return
  }
  func.func @transform_0(%arg0: i32, %arg1: i32, %arg2: i32) -> (i32, i32) {
    %c0_i32 = arith.constant 0 : i32
    return %arg0, %arg2 : i32, i32
  }
  func.func @transform_1(%arg0: i32, %arg1: i32, %arg2: i32) -> (i32, i32) {
    %c0_i32 = arith.constant 0 : i32
    return %arg2, %arg1 : i32, i32
  }
  func.func @transform_2(%arg0: i32, %arg1: i32, %arg2: i32) -> (i32, i32) {
    %c0_i32 = arith.constant 0 : i32
    %c0_i32_0 = arith.constant 0 : i32
    return %c0_i32, %arg1 : i32, i32
  }
  func.func @transform_3(%arg0: i32, %arg1: i32, %arg2: i32) -> (i32, i32) {
    %c0_i32 = arith.constant 0 : i32
    return %arg0, %arg1 : i32, i32
  }
}

</mosaic_0001>

<bundles_post_ra>
// kernel: classifier_square.1
= control target key start
LH: loop header
LB: loop body
LE: loop exit
PB: predicated region body
PF: predicated region fallthrough
CT: control target
= control target key end

     0   :  { %s254_s0 = inlined_call_operand.vmem [shape: bf16[8,128], index: 0, kind: input, shape index: {}]   ;;  %s255_s1 = inlined_call_operand.vmem [shape: bf16[128,128], index: 1, kind: input, shape index: {}]   ;;  %s256_s2 = inlined_call_operand.vmem [shape: f32[1,128], index: 2, kind: input, shape index: {}]   ;;  %s257_s3 = inlined_call_operand.hbm [shape: f32[8,128], index: 3, kind: output, shape index: {}]  }
   0x1   :  { %v171_v0 = vld [vmem:[%s255_s1 + $0x38] sm:$0xff]  ;;  %v170_v1 = vld [vmem:[%s255_s1 + $0x30] sm:$0xff] }
   0x2   :  { %80 = vmatpush.bf16.msra.mxu0 %v171_v0 }
   0x3   :  { %8 = vsyncpa [#allocation3], 0  ;;  %v169_v2 = vld [vmem:[%s255_s1 + $0x28] sm:$0xff]  ;;  %v168_v3 = vld [vmem:[%s255_s1 + $0x20] sm:$0xff]  ;;  %s200_s5 = smov [#allocation2]   ;;  %s123_s9 = sshll.u32 %s257_s3, 4  ;;  %s124_s9 = int_to_ptr.hbm [resolvable:$true] %s123_s9 }
   0x4   :  { %v167_v4 = vld [vmem:[%s255_s1 + $0x18] sm:$0xff]  ;;  %v166_v5 = vld [vmem:[%s255_s1 + $0x10] sm:$0xff]  ;;  %v165_v6 = vld [vmem:[%s255_s1 + $0x8] sm:$0xff]  ;;  %s121_s6 = sshll.u32 %s200_s5, 4  ;;  %s122_s6 = int_to_ptr.vmem [resolvable:$true] %s121_s6 }
   0x5   :  { %v164_v7 = vld [vmem:[%s255_s1] sm:$0xff] }
   0x6   :  { %81 = vmatpush.bf16.msra.mxu0 %v170_v1  ;;  %v15_v8 = vld [vmem:[%s254_s0] sm:$0xf] }
   0x7   :  { %v173_v9 = vld [vmem:[%s256_s2] ss:$0 sm:$0xff] }
   0xa   :  { %82 = vmatpush.bf16.msra.mxu0 %v169_v2 }
   0xe   :  { %83 = vmatpush.bf16.msra.mxu0 %v168_v3 }
  0x12   :  { %84 = vmatpush.bf16.msra.mxu0 %v167_v4 }
  0x16   :  { %85 = vmatpush.bf16.msra.mxu0 %v166_v5 }
  0x1a   :  { %86 = vmatpush.bf16.msra.mxu0 %v165_v6 }
  0x1e   :  { %87 = vmatpush.bf16.msra.mxu0 %v164_v7 }
  0x21   :  { %88 = vmatmul.bf16.vlgmr.msra.gmra.mxu0 %v15_v8 }
  0x9e   :  { %v89_v10 = vpop.f32.mrf.mxu0 }
  0x9f   :  { %v113_v11 = vsub.f32 %v89_v10, %v173_v9 }
  0xa1   :  { %v114_v12 = vmul.f32 %v113_v11, %v113_v11 }
  0xa3   :  { %115 = vst [vmem:[#allocation2] sm:$0xff] %v114_v12 }
  0xa4   :  { %126 = dma.vmem_to_hbm [thread:$0]  %s122_s6, 128, %s124_s9, [#allocation3]  }
  0xa6   :  { %v91_v13 = vpop.f32.mrf.mxu0 }
  0xa7   :  { %198 = dma.done.wait [#allocation3], 128  }
  0xa8   :  { %199 = vsyncadd [#allocation3], 4294967168 }
  0xa9   :  { %131 = vsyncpa [#allocation3], 1 }

</bundles_post_ra>
